<compile_context>
chip_gen: v5e
topology: v5e:2x2
jax: 0.10.0
libtpu: 0.0.40
codegen_flags: <defaults>
</compile_context>

<pallas_src>
import math
import jax
import jax.numpy as jnp
from jax import lax
from jax.experimental import pallas as pl
from jax.experimental.pallas import tpu as pltpu

DIM = 1                       # module-level `dim = 1`
NUM_HEADS = 8
DH = DIM * NUM_HEADS          # 8
N = 128                       # tokens (TPU tile friendly)
DROPOUT_P = 0.1
KEEP_SCALE = 1.0 / (1.0 - DROPOUT_P)
SCALE = math.sqrt(DIM)        # scores.div(1/sqrt(dim)) == scores * sqrt(dim) (== 1.0 here)
DROP_THRESHOLD = int(DROPOUT_P * (1 << 32))   # keep iff uint32 bits >= threshold


def attn_kernel(x1_row_ref, x2_col_ref, wq_ref, wk_ref, wv_ref, bits_ref, o_t_ref):
    x1_row = x1_row_ref[...]          # (1, N)  lane-dense
    x2_col = x2_col_ref[...]          # (N, 1)
    wq = wq_ref[...]                  # (DH, 1) == PyTorch Linear weight (out, in)
    wk = wk_ref[...]                  # (DH, 1)
    wv = wv_ref[...]                  # (DH, 1)

    # Rank-1 structure (DIM == 1):
    #   q = x1 wq^T, k = x2 wk^T, v = x1 wv^T  (outer products)
    #   scores = (q k^T) * sqrt(DIM) = c * x1 x2^T,   c = sqrt(DIM) * <wq, wk>
    #   out    = dropout(softmax(scores)) @ v = (attn @ x1) wv^T
    c = SCALE * jnp.sum(wq * wk)                       # scalar

    # Transposed scores: scores_t[j, i] = c * x2[j] * x1[i]   -> (N, N)
    scores_t = (c * x2_col) * x1_row

    # Softmax over keys j (axis 0 in this transposed layout).
    m = jnp.max(scores_t, axis=0, keepdims=True)       # (1, N)
    e = jnp.exp(scores_t - m)
    denom = jnp.sum(e, axis=0, keepdims=True)          # (1, N)
    p_t = e * pl.reciprocal(denom, approx=True)

    # Dropout p=0.1: integer-domain keep test on pre-generated uint32 bits.
    keep = bits_ref[...] >= jnp.uint32(DROP_THRESHOLD)
    p_t = jnp.where(keep, p_t * KEEP_SCALE, jnp.float32(0.0))

    # s_row[0, i] = sum_j x1[j] * attn[i, j]   (matvec on the MXU, no transpose)
    s_row = lax.dot_general(x1_row, p_t, (((1,), (0,)), ((), ())),
                            preferred_element_type=jnp.float32)   # (1, N)

    # out^T = wv s  -> a single lane-dense (8, 128) tile, unmasked stores.
    o_t_ref[...] = wv * s_row


def model_forward(x1, x2, wq, wk, wv, dropout_key):
    """x1, x2: (N, DIM) f32; wq/wk/wv: (DH, DIM) (PyTorch nn.Linear weight layout)."""
    n = x1.shape[0]
    x1_row = x1.reshape(1, n)          # DIM == 1 -> pure reshape, lane-dense
    x2_col = x2.reshape(n, 1)
    bits = jax.random.bits(dropout_key, (n, n), dtype=jnp.uint32)

    out_t = pl.pallas_call(
        attn_kernel,
        out_shape=jax.ShapeDtypeStruct((DH, n), jnp.float32),
        grid=(1,),
        in_specs=[
            pl.BlockSpec((1, n), lambda i: (0, 0)),
            pl.BlockSpec((n, 1), lambda i: (0, 0)),
            pl.BlockSpec((DH, DIM), lambda i: (0, 0)),
            pl.BlockSpec((DH, DIM), lambda i: (0, 0)),
            pl.BlockSpec((DH, DIM), lambda i: (0, 0)),
            pl.BlockSpec((n, n), lambda i: (0, 0)),
        ],
        out_specs=pl.BlockSpec((DH, n), lambda i: (0, 0)),
        compiler_params=pltpu.CompilerParams(
            dimension_semantics=("arbitrary",)),
    )(x1_row, x2_col, wq, wk, wv, bits)

    # Kernel wrote the lane-dense (DH, N) tile; present PyTorch's (N, DH).
    return out_t.T


if __name__ == "__main__":
    key = jax.random.PRNGKey(0)
    k1, k2, kq, kk, kv, kd = jax.random.split(key, 6)

    # Inputs (N, DIM) — consistent with the module's forward (dim=1).
    x1 = jax.random.normal(k1, (N, DIM), dtype=jnp.float32)
    x2 = jax.random.normal(k2, (N, DIM), dtype=jnp.float32)

    # Deterministic Linear weights in PyTorch layout (out_features, in_features).
    bound = 1.0 / math.sqrt(DIM)
    wq = jax.random.uniform(kq, (DH, DIM), jnp.float32, -bound, bound)
    wk = jax.random.uniform(kk, (DH, DIM), jnp.float32, -bound, bound)
    wv = jax.random.uniform(kv, (DH, DIM), jnp.float32, -bound, bound)

    out = model_forward(x1, x2, wq, wk, wv, kd)
    jax.block_until_ready(out)
    assert out.shape == (N, DH) and out.dtype == jnp.float32

    # Pure-JAX reference using the same dropout bits (mask applied to attn^T in
    # the kernel, hence the .T on the keep mask here).
    bits = jax.random.bits(kd, (N, N), dtype=jnp.uint32)
    q = x1 @ wq.T
    k = x2 @ wk.T
    v = x1 @ wv.T
    scores = (q @ k.T) * SCALE
    attn = jax.nn.softmax(scores, axis=-1)
    keep = (bits >= jnp.uint32(DROP_THRESHOLD)).T
    attn_d = jnp.where(keep, attn * KEEP_SCALE, 0.0)
    ref = attn_d @ v

    err = float(jnp.max(jnp.abs(out - ref)))
    tol = float(5e-3 + 5e-2 * jnp.max(jnp.abs(ref)))   # loose: approx reciprocal
    assert err <= tol, f"max abs err {err} > tol {tol}"
    print("KERNEL_OK")
</pallas_src>

<mosaic_0001>
module attributes {stable_mosaic.version = 11 : i64} {
  func.func @attn_kernel(%arg0: i32, %arg1: memref<1x128xf32, #tpu.memory_space<vmem>>, %arg2: memref<128x1xf32, #tpu.memory_space<vmem>>, %arg3: memref<8x1xf32, #tpu.memory_space<vmem>>, %arg4: memref<8x1xf32, #tpu.memory_space<vmem>>, %arg5: memref<8x1xf32, #tpu.memory_space<vmem>>, %arg6: memref<128x128xi32, #tpu.memory_space<vmem>>, %arg7: memref<8x128xf32, #tpu.memory_space<vmem>>) attributes {dimension_semantics = [#tpu.dimension_semantics<arbitrary>], iteration_bounds = array<i64: 1>, scalar_prefetch = 0 : i64, scratch_operands = 0 : i64, tpu.core_type = #tpu.core_type<tc>, window_params = [{pipeline_mode = #tpu.pipeline_mode<synchronous>, transform_indices = @transform_0, window_bounds = array<i64: 1, 128>}, {pipeline_mode = #tpu.pipeline_mode<synchronous>, transform_indices = @transform_1, window_bounds = array<i64: 128, 1>}, {pipeline_mode = #tpu.pipeline_mode<synchronous>, transform_indices = @transform_2, window_bounds = array<i64: 8, 1>}, {pipeline_mode = #tpu.pipeline_mode<synchronous>, transform_indices = @transform_3, window_bounds = array<i64: 8, 1>}, {pipeline_mode = #tpu.pipeline_mode<synchronous>, transform_indices = @transform_4, window_bounds = array<i64: 8, 1>}, {pipeline_mode = #tpu.pipeline_mode<synchronous>, transform_indices = @transform_5, window_bounds = array<i64: 128, 128>}, {pipeline_mode = #tpu.pipeline_mode<synchronous>, transform_indices = @transform_6, window_bounds = array<i64: 8, 128>}]} {
    %c0 = arith.constant 0 : index
    %c0_0 = arith.constant 0 : index
    %0 = vector.load %arg1[%c0, %c0_0] : memref<1x128xf32, #tpu.memory_space<vmem>>, vector<1x128xf32>
    %c0_1 = arith.constant 0 : index
    %c0_2 = arith.constant 0 : index
    %1 = vector.load %arg2[%c0_1, %c0_2] : memref<128x1xf32, #tpu.memory_space<vmem>>, vector<128x1xf32>
    %c0_3 = arith.constant 0 : index
    %c0_4 = arith.constant 0 : index
    %2 = vector.load %arg3[%c0_3, %c0_4] : memref<8x1xf32, #tpu.memory_space<vmem>>, vector<8x1xf32>
    %c0_5 = arith.constant 0 : index
    %c0_6 = arith.constant 0 : index
    %3 = vector.load %arg4[%c0_5, %c0_6] : memref<8x1xf32, #tpu.memory_space<vmem>>, vector<8x1xf32>
    %c0_7 = arith.constant 0 : index
    %c0_8 = arith.constant 0 : index
    %4 = vector.load %arg5[%c0_7, %c0_8] : memref<8x1xf32, #tpu.memory_space<vmem>>, vector<8x1xf32>
    %5 = arith.mulf %2, %3 : vector<8x1xf32>
    %6 = vector.shape_cast %5 : vector<8x1xf32> to vector<1x8x1xf32>
    %cst = arith.constant dense<0.000000e+00> : vector<1xf32>
    %7 = vector.multi_reduction <add>, %6, %cst [1, 2] : vector<1x8x1xf32> to vector<1xf32>
    %8 = vector.shape_cast %7 : vector<1xf32> to vector<1x1x1xf32>
    %9 = vector.extract %8[0, 0, 0] : f32 from vector<1x1x1xf32>
    %cst_9 = arith.constant 1.000000e+00 : f32
    %10 = arith.mulf %cst_9, %9 : f32
    %11 = vector.broadcast %10 : f32 to vector<128x1xf32>
    %12 = arith.mulf %11, %1 : vector<128x1xf32>
    %13 = vector.broadcast %12 : vector<128x1xf32> to vector<128x128xf32>
    %14 = vector.broadcast %0 : vector<1x128xf32> to vector<128x128xf32>
    %15 = arith.mulf %13, %14 : vector<128x128xf32>
    %cst_10 = arith.constant dense<0xFF800000> : vector<128xf32>
    %16 = vector.multi_reduction <maximumf>, %15, %cst_10 [0] : vector<128x128xf32> to vector<128xf32>
    %17 = vector.shape_cast %16 : vector<128xf32> to vector<1x128xf32>
    %18 = vector.broadcast %17 : vector<1x128xf32> to vector<128x128xf32>
    %19 = arith.subf %15, %18 : vector<128x128xf32>
    %20 = math.exp %19 : vector<128x128xf32>
    %cst_11 = arith.constant dense<0.000000e+00> : vector<128xf32>
    %21 = vector.multi_reduction <add>, %20, %cst_11 [0] : vector<128x128xf32> to vector<128xf32>
    %22 = vector.shape_cast %21 : vector<128xf32> to vector<1x128xf32>
    %23 = tpu.reciprocal %22 {approx = true} : vector<1x128xf32> -> vector<1x128xf32>
    %24 = vector.broadcast %23 : vector<1x128xf32> to vector<128x128xf32>
    %25 = arith.mulf %20, %24 : vector<128x128xf32>
    %c0_12 = arith.constant 0 : index
    %c0_13 = arith.constant 0 : index
    %26 = vector.load %arg6[%c0_12, %c0_13] : memref<128x128xi32, #tpu.memory_space<vmem>>, vector<128x128xi32>
    %c429496729_i32 = arith.constant 429496729 : i32
    %27 = vector.broadcast %c429496729_i32 : i32 to vector<128x128xi32>
    %28 = arith.cmpi uge, %26, %27 : vector<128x128xi32>
    %cst_14 = arith.constant 1.11111116 : f32
    %29 = vector.broadcast %cst_14 : f32 to vector<128x128xf32>
    %30 = arith.mulf %25, %29 : vector<128x128xf32>
    %cst_15 = arith.constant 0.000000e+00 : f32
    %31 = vector.broadcast %cst_15 : f32 to vector<128x128xf32>
    %32 = arith.select %28, %30, %31 : vector<128x128xi1>, vector<128x128xf32>
    %cst_16 = arith.constant dense<0.000000e+00> : vector<1x128xf32>
    %33 = tpu.matmul %0, %32, %cst_16 {dimension_numbers = #tpu.dot_dimension_numbers<[1], [0], [0], [1], [0, 0, 1, 1], [], []>} : vector<1x128xf32>, vector<128x128xf32>, vector<1x128xf32> -> vector<1x128xf32>
    %34 = vector.broadcast %4 : vector<8x1xf32> to vector<8x128xf32>
    %35 = vector.broadcast %33 : vector<1x128xf32> to vector<8x128xf32>
    %36 = arith.mulf %34, %35 : vector<8x128xf32>
    %c0_17 = arith.constant 0 : index
    %c0_18 = arith.constant 0 : index
    %37 = vector.load %arg7[%c0_17, %c0_18] : memref<8x128xf32, #tpu.memory_space<vmem>>, vector<8x128xf32>
    tpu.vector_store %arg7[%c0_17, %c0_18], %36 {strides = array<i32>} : memref<8x128xf32, #tpu.memory_space<vmem>>, vector<8x128xf32>,
    return
  }
  func.func @transform_0(%arg0: i32) -> (i32, i32) {
    %c0_i32 = arith.constant 0 : i32
    %c0_i32_0 = arith.constant 0 : i32
    %c0_i32_1 = arith.constant 0 : i32
    return %c0_i32, %c0_i32_0 : i32, i32
  }
  func.func @transform_1(%arg0: i32) -> (i32, i32) {
    %c0_i32 = arith.constant 0 : i32
    %c0_i32_0 = arith.constant 0 : i32
    %c0_i32_1 = arith.constant 0 : i32
    return %c0_i32, %c0_i32_0 : i32, i32
  }
  func.func @transform_2(%arg0: i32) -> (i32, i32) {
    %c0_i32 = arith.constant 0 : i32
    %c0_i32_0 = arith.constant 0 : i32
    %c0_i32_1 = arith.constant 0 : i32
    return %c0_i32, %c0_i32_0 : i32, i32
  }
  func.func @transform_3(%arg0: i32) -> (i32, i32) {
    %c0_i32 = arith.constant 0 : i32
    %c0_i32_0 = arith.constant 0 : i32
    %c0_i32_1 = arith.constant 0 : i32
    return %c0_i32, %c0_i32_0 : i32, i32
  }
  func.func @transform_4(%arg0: i32) -> (i32, i32) {
    %c0_i32 = arith.constant 0 : i32
    %c0_i32_0 = arith.constant 0 : i32
    %c0_i32_1 = arith.constant 0 : i32
    return %c0_i32, %c0_i32_0 : i32, i32
  }
  func.func @transform_5(%arg0: i32) -> (i32, i32) {
    %c0_i32 = arith.constant 0 : i32
    %c0_i32_0 = arith.constant 0 : i32
    %c0_i32_1 = arith.constant 0 : i32
    return %c0_i32, %c0_i32_0 : i32, i32
  }
  func.func @transform_6(%arg0: i32) -> (i32, i32) {
    %c0_i32 = arith.constant 0 : i32
    %c0_i32_0 = arith.constant 0 : i32
    %c0_i32_1 = arith.constant 0 : i32
    return %c0_i32, %c0_i32_0 : i32, i32
  }
}

</mosaic_0001>

<bundles_post_ra>
// kernel: tpu_custom_call.1
= control target key start
LH: loop header
LB: loop body
LE: loop exit
PB: predicated region body
PF: predicated region fallthrough
CT: control target
= control target key end

     0   :  { %vm45_vm0 = vcmask 7168   ;;  %s778_s0 = inlined_call_operand.vmem [shape: f32[1,128], index: 0, kind: input, shape index: {}]   ;;  %s779_s1 = inlined_call_operand.vmem [shape: f32[128,1], index: 1, kind: input, shape index: {}]   ;;  %s780_s2 = inlined_call_operand.vmem [shape: f32[8,1], index: 2, kind: input, shape index: {}]   ;;  %s781_s3 = inlined_call_operand.vmem [shape: f32[8,1], index: 3, kind: input, shape index: {}]   ;;  %s782_s4 = inlined_call_operand.vmem [shape: f32[8,1], index: 4, kind: input, shape index: {}]   ;;  %s783_s5 = inlined_call_operand.vmem [shape: u32[128,128], index: 5, kind: input, shape index: {}]   ;;  %s784_s6 = inlined_call_operand.hbm [shape: f32[8,128], index: 6, kind: output, shape index: {}]  }
   0x1   :  { %v41_v0 = vld [vmem:[%s780_s2] sm:$0xff] }
   0x2   :  { %v42_v1 = vld [vmem:[%s781_s3] sm:$0xff] }
   0x3   :  { %11 = vsyncpa [#allocation3], 0  ;;  %v44_v2 = vmul.f32 %v42_v1, %v41_v0  ;;  %v519_v11 = vmov 0   ;;  %v28_v12 = vld [vmem:[%s779_s1 + $0x18] sm:$0xff]  ;;  %v26_v13 = vld [vmem:[%s779_s1 + $0x8] sm:$0xff]  ;;  %s520_s13 = smov [#allocation2]  }
   0x4   :  { %457 = vset.pattern.permute.xlu2 %v519_v11  ;;  %456 = vset.pattern.permute.xlu1 %v519_v11  ;;  %v25_v14 = vld [vmem:[%s779_s1] sm:$0xff]  ;;  %v27_v20 = vld [vmem:[%s779_s1 + $0x10] sm:$0xff]  ;;  %v38_v21 = vld [vmem:[%s779_s1 + $0x68] sm:$0xff]  ;;  %s408_s14 = sshll.u32 %s520_s13, 4  ;;  %s410_s17 = sshll.u32 %s784_s6, 4  ;;  %s409_s14 = int_to_ptr.vmem [resolvable:$true] %s408_s14  ;;  %s411_s17 = int_to_ptr.hbm [resolvable:$true] %s410_s17 }
   0x5   :  { %v46_v3 = vsel %vm45_vm0, %v44_v2, 0.0  ;;  %455 = vset.pattern.permute.xlu0 %v519_v11  ;;  %v29_v19 = vld [vmem:[%s779_s1 + $0x20] sm:$0xff]  ;;  %v31_v25 = vld [vmem:[%s779_s1 + $0x30] sm:$0xff]  ;;  %v30_v26 = vld [vmem:[%s779_s1 + $0x28] sm:$0xff] }
   0x6   :  { %47 = vadd.xlane.f32.xlu0 %v46_v3  ;;  %v43_v29 = vld [vmem:[%s782_s4] sm:$0xff]  ;;  %v32_v31 = vld [vmem:[%s779_s1 + $0x38] sm:$0xff]  ;;  %v35_v34 = vld [vmem:[%s779_s1 + $0x50] sm:$0xff] }
   0x7   :  { %v33_v30 = vld [vmem:[%s779_s1 + $0x40] sm:$0xff]  ;;  %v34_v35 = vld [vmem:[%s779_s1 + $0x48] sm:$0xff]  ;;  %v36_v39 = vld [vmem:[%s779_s1 + $0x58] sm:$0xff] }
   0x8   :  { %v37_v38 = vld [vmem:[%s779_s1 + $0x60] sm:$0xff]  ;;  %v40_v42 = vld [vmem:[%s779_s1 + $0x78] sm:$0xff]  ;;  %v39_v43 = vld [vmem:[%s779_s1 + $0x70] sm:$0xff] }
   0x9   :  { %v458_v58 = vld [vmem:[%s778_s0] ss:$0 sm:$0xff] }
  0x79   :  { %v48_v4 = vpop.xlane.xlu0 %47 }
  0x7a   :  { %v49_v5 = vrot.slane %v48_v4, 4 }
  0x7c   :  { %v50_v6 = vadd.f32 %v49_v5, %v48_v4 }
  0x7e   :  { %v51_v7 = vrot.slane %v50_v6, 2 }
  0x80   :  { %v52_v8 = vadd.f32 %v51_v7, %v50_v6 }
  0x82   :  { %v53_v9 = vrot.slane %v52_v8, 1 }
  0x84   :  { %v54_v10 = vadd.f32 %v53_v9, %v52_v8 }
  0x86   :  { %451 = vpush %v54_v10 }
  0xb7   :  { %s452_s29 = spop %451 }
  0xb8   :  { %v56_v15 = vstv %s452_s29 }
  0xb9   :  { %v60_v16 = vmul.f32 %v56_v15, %v28_v12  ;;  %v58_v17 = vmul.f32 %v56_v15, %v26_v13  ;;  %v57_v18 = vmul.f32 %v56_v15, %v25_v14  ;;  %v61_v22 = vmul.f32 %v56_v15, %v29_v19 }
  0xba   :  { %v59_v23 = vmul.f32 %v56_v15, %v27_v20  ;;  %v70_v24 = vmul.f32 %v56_v15, %v38_v21  ;;  %v63_v27 = vmul.f32 %v56_v15, %v31_v25  ;;  %v62_v28 = vmul.f32 %v56_v15, %v30_v26 }
  0xbb   :  { %90 = vperm.xlu2 %457, %v60_v16   ;;  %80 = vperm.xlu1 %456, %v58_v17   ;;  %v65_v32 = vmul.f32 %v56_v15, %v33_v30  ;;  %v64_v33 = vmul.f32 %v56_v15, %v32_v31  ;;  %v67_v36 = vmul.f32 %v56_v15, %v35_v34 }
  0xbc   :  { %75 = vperm.xlu0 %455, %v57_v18   ;;  %v66_v37 = vmul.f32 %v56_v15, %v34_v35  ;;  %v69_v40 = vmul.f32 %v56_v15, %v37_v38  ;;  %v68_v41 = vmul.f32 %v56_v15, %v36_v39  ;;  %v72_v44 = vmul.f32 %v56_v15, %v40_v42 }
  0xbd   :  { %v71_v45 = vmul.f32 %v56_v15, %v39_v43 }
  0xc3   :  { %95 = vperm.xlu2 %457, %v61_v22   ;;  %85 = vperm.xlu1 %456, %v59_v23  }
  0xc4   :  { %140 = vperm.xlu0 %455, %v70_v24  }
  0xcb   :  { %105 = vperm.xlu2 %457, %v63_v27   ;;  %100 = vperm.xlu1 %456, %v62_v28  }
  0xcc   :  { %397 = vperm.xlu0 %455, %v43_v29  }
  0xd3   :  { %115 = vperm.xlu2 %457, %v65_v32   ;;  %110 = vperm.xlu1 %456, %v64_v33  }
  0xdb   :  { %125 = vperm.xlu2 %457, %v67_v36   ;;  %120 = vperm.xlu1 %456, %v66_v37  }
  0xe3   :  { %135 = vperm.xlu2 %457, %v69_v40   ;;  %130 = vperm.xlu1 %456, %v68_v41  }
  0xeb   :  { %150 = vperm.xlu2 %457, %v72_v44   ;;  %145 = vperm.xlu1 %456, %v71_v45  }
 0x115   :  { %v91_v46 = vpop.permute.xlu2 %90 }
 0x116   :  { %v159_v3 = vmul.f32 %v458_v58, %v91_v46 }
 0x11d   :  { %v96_v47 = vpop.permute.xlu2 %95 }
 0x11e   :  { %v160_v2 = vmul.f32 %v458_v58, %v96_v47 }
 0x125   :  { %v106_v49 = vpop.permute.xlu2 %105 }
 0x126   :  { %v162_v4 = vmul.f32 %v458_v58, %v106_v49 }
 0x12d   :  { %v81_v48 = vpop.permute.xlu1 %80  ;;  %v116_v51 = vpop.permute.xlu2 %115 }
 0x12e   :  { %v76_v56 = vpop.permute.xlu0 %75  ;;  %v157_v62 = vmul.f32 %v458_v58, %v81_v48  ;;  %v164_v12 = vmul.f32 %v458_v58, %v116_v51 }
 0x12f   :  { %v156_v60 = vmul.f32 %v458_v58, %v76_v56 }
 0x131   :  { %v172_v7 = vmax.f32 %v156_v60, %v160_v2 }
 0x133   :  { %v176_v18 = vmax.f32 %v172_v7, %v164_v12 }
 0x135   :  { %v86_v50 = vpop.permute.xlu1 %85  ;;  %v126_v54 = vpop.permute.xlu2 %125 }
 0x136   :  { %v158_v63 = vmul.f32 %v458_v58, %v86_v50  ;;  %v141_v8 = vpop.permute.xlu0 %140  ;;  %v624_v14 = vmul.f32 %v458_v58, %v126_v54 }
 0x137   :  { %v626_v15 = vmul.f32 %v458_v58, %v141_v8 }
 0x138   :  { %v174_v9 = vmax.f32 %v158_v63, %v162_v4 }
 0x13a   :  { %v178_v23 = vmax.f32 %v174_v9, %v624_v14 }
 0x13d   :  { %v101_v52 = vpop.permute.xlu1 %100  ;;  %v136_v57 = vpop.permute.xlu2 %135 }
 0x13e   :  { %v161_v59 = vmul.f32 %v458_v58, %v101_v52  ;;  %v628_v16 = vmul.f32 %v458_v58, %v136_v57 }
 0x140   :  { %v173_v5 = vmax.f32 %v157_v62, %v161_v59  ;;  %v180_v24 = vmax.f32 %v176_v18, %v628_v16 }
 0x145   :  { %v111_v53 = vpop.permute.xlu1 %110  ;;  %v151_v13 = vpop.permute.xlu2 %150 }
 0x146   :  { %v616_v0 = vmul.f32 %v458_v58, %v111_v53  ;;  %v631_v20 = vmul.f32 %v458_v58, %v151_v13 }
 0x148   :  { %v175_v10 = vmax.f32 %v159_v3, %v616_v0 }
 0x14d   :  { %v121_v55 = vpop.permute.xlu1 %120 }
 0x14e   :  { %v618_v1 = vmul.f32 %v458_v58, %v121_v55 }
 0x150   :  { %v177_v11 = vmax.f32 %v173_v5, %v618_v1 }
 0x152   :  { %v181_v21 = vmax.f32 %v177_v11, %v626_v15 }
 0x154   :  { %v184_v27 = vmax.f32 %v180_v24, %v181_v21 }
 0x155   :  { %v131_v61 = vpop.permute.xlu1 %130 }
 0x156   :  { %v620_v6 = vmul.f32 %v458_v58, %v131_v61 }
 0x158   :  { %v179_v17 = vmax.f32 %v175_v10, %v620_v6 }
 0x15a   :  { %v183_v25 = vmax.f32 %v179_v17, %v631_v20 }
 0x15d   :  { %v146_v19 = vpop.permute.xlu1 %145 }
 0x15e   :  { %v634_v22 = vmul.f32 %v458_v58, %v146_v19 }
 0x160   :  { %v182_v26 = vmax.f32 %v178_v23, %v634_v22 }
 0x162   :  { %v185_v28 = vmax.f32 %v182_v26, %v183_v25 }
 0x164   :  { %v186_v29 = vmax.f32 %v184_v27, %v185_v28 }
 0x166   :  { %v187_v30 = vrot.slane %v186_v29, 4 }
 0x168   :  { %v188_v31 = vmax.f32 %v186_v29, %v187_v30 }
 0x16a   :  { %v189_v32 = vrot.slane %v188_v31, 2 }
 0x16c   :  { %v190_v33 = vmax.f32 %v188_v31, %v189_v32 }
 0x16e   :  { %v191_v34 = vrot.slane %v190_v33, 1 }
 0x170   :  { %v640_v35 = vmax.f32 %v190_v33, %v191_v34 }
 0x172   :  { %v193_v36 = vsub.f32 %v156_v60, %v640_v35  ;;  %v194_v37 = vsub.f32 %v157_v62, %v640_v35  ;;  %v195_v38 = vsub.f32 %v158_v63, %v640_v35  ;;  %v196_v39 = vsub.f32 %v159_v3, %v640_v35 }
 0x173   :  { %v197_v41 = vsub.f32 %v160_v2, %v640_v35  ;;  %v198_v44 = vsub.f32 %v161_v59, %v640_v35  ;;  %v199_v46 = vsub.f32 %v162_v4, %v640_v35  ;;  %v200_v48 = vsub.f32 %v616_v0, %v640_v35 }
 0x174   :  { %v209_v40 = vmul.f32 1.442695, %v193_v36  ;;  %v211_v42 = vmul.f32 1.442695, %v194_v37  ;;  %v213_v43 = vmul.f32 1.442695, %v195_v38  ;;  %v201_v52 = vsub.f32 %v164_v12, %v640_v35 }
 0x175   :  { %v215_v45 = vmul.f32 1.442695, %v196_v39  ;;  %v217_v47 = vmul.f32 1.442695, %v197_v41  ;;  %v219_v49 = vmul.f32 1.442695, %v198_v44  ;;  %v202_v56 = vsub.f32 %v618_v1, %v640_v35 }
 0x176   :  { %459 = vpow2.f32 %v209_v40  ;;  %v221_v53 = vmul.f32 1.442695, %v199_v46  ;;  %v223_v57 = vmul.f32 1.442695, %v200_v48  ;;  %v203_v60 = vsub.f32 %v624_v14, %v640_v35  ;;  %v294_v41 = vld [vmem:[%s783_s5 + $0x78] sm:$0xff]  ;;  %v292_v44 = vld [vmem:[%s783_s5 + $0x68] sm:$0xff] }
 0x177   :  { %461 = vpow2.f32 %v211_v42  ;;  %v225_v61 = vmul.f32 1.442695, %v201_v52  ;;  %v204_v0 = vsub.f32 %v620_v6, %v640_v35  ;;  %v227_v1 = vmul.f32 1.442695, %v202_v56  ;;  %v293_v42 = vld [vmem:[%s783_s5 + $0x70] sm:$0xff]  ;;  %v290_v56 = vld [vmem:[%s783_s5 + $0x58] sm:$0xff] }
 0x178   :  { %463 = vpow2.f32 %v213_v43  ;;  %v205_v4 = vsub.f32 %v628_v16, %v640_v35  ;;  %v229_v5 = vmul.f32 1.442695, %v203_v60  ;;  %v206_v9 = vsub.f32 %v626_v15, %v640_v35 }
 0x179   :  { %465 = vpow2.f32 %v215_v45  ;;  %v231_v6 = vmul.f32 1.442695, %v204_v0  ;;  %v207_v12 = vsub.f32 %v634_v22, %v640_v35  ;;  %v208_v15 = vsub.f32 %v631_v20, %v640_v35 }
 0x17a   :  { %467 = vpow2.f32 %v217_v47  ;;  %v233_v13 = vmul.f32 1.442695, %v205_v4  ;;  %v235_v17 = vmul.f32 1.442695, %v206_v9  ;;  %v434_v43 = vxor.u32 2147483648, %v294_v41  ;;  %v287_v9 = vld [vmem:[%s783_s5 + $0x40] sm:$0xff] }
 0x17b   :  { %469 = vpow2.f32 %v219_v49  ;;  %v237_v21 = vmul.f32 1.442695, %v207_v12  ;;  %v239_v24 = vmul.f32 1.442695, %v208_v15  ;;  %v433_v46 = vxor.u32 2147483648, %v293_v42  ;;  %v291_v49 = vld [vmem:[%s783_s5 + $0x60] sm:$0xff] }
 0x17c   :  { %v651_v50 = vpop.eup %459  ;;  %471 = vpow2.f32 %v221_v53  ;;  %vm342_vm1 = vcmp.ge.s32.totalorder %v434_v43, 2576980377  ;;  %v432_v52 = vxor.u32 2147483648, %v292_v44  ;;  %v24_v43 = vld [vmem:[%s778_s0] sm:$0x1] }
 0x17d   :  { %v653_v51 = vpop.eup %461  ;;  %473 = vpow2.f32 %v223_v57  ;;  %vm339_vm2 = vcmp.ge.s32.totalorder %v433_v46, 2576980377  ;;  %v431_v57 = vxor.u32 2147483648, %v291_v49 }
 0x17e   :  { %v241_v54 = vadd.f32 %v653_v51, %v651_v50  ;;  %v658_v55 = vpop.eup %463  ;;  %475 = vpow2.f32 %v225_v61  ;;  %v289_v61 = vld [vmem:[%s783_s5 + $0x50] sm:$0xff]  ;;  %vm336_vm3 = vcmp.ge.s32.totalorder %v432_v52, 2576980377 }
 0x17f   :  { %v663_v59 = vpop.eup %465  ;;  %477 = vpow2.f32 %v227_v1  ;;  %vm333_vm4 = vcmp.ge.s32.totalorder %v431_v57, 2576980377  ;;  %v429_v4 = vxor.u32 2147483648, %v289_v61 }
 0x180   :  { %v242_v58 = vadd.f32 %v658_v55, %v241_v54  ;;  %v668_v63 = vpop.eup %467  ;;  %479 = vpow2.f32 %v229_v5 }
 0x181   :  { %v673_v3 = vpop.eup %469  ;;  %481 = vpow2.f32 %v231_v6  ;;  %vm327_vm6 = vcmp.ge.s32.totalorder %v429_v4, 2576980377 }
 0x182   :  { %v243_v62 = vadd.f32 %v663_v59, %v242_v58  ;;  %v678_v8 = vpop.eup %471  ;;  %483 = vpow2.f32 %v233_v13  ;;  %v286_v13 = vld [vmem:[%s783_s5 + $0x38] sm:$0xff] }
 0x183   :  { %v683_v11 = vpop.eup %473  ;;  %485 = vpow2.f32 %v235_v17 }
 0x184   :  { %v244_v2 = vadd.f32 %v668_v63, %v243_v62  ;;  %v688_v16 = vpop.eup %475  ;;  %487 = vpow2.f32 %v237_v21  ;;  %v430_v62 = vxor.u32 2147483648, %v290_v56  ;;  %v426_v21 = vxor.u32 2147483648, %v286_v13 }
 0x185   :  { %v693_v19 = vpop.eup %477  ;;  %489 = vpow2.f32 %v239_v24 }
 0x186   :  { %v245_v7 = vadd.f32 %v673_v3, %v244_v2  ;;  %v480_v22 = vpop.eup %479  ;;  %v288_v2 = vld [vmem:[%s783_s5 + $0x48] sm:$0xff]  ;;  %vm330_vm5 = vcmp.ge.s32.totalorder %v430_v62, 2576980377  ;;  %vm318_vm9 = vcmp.ge.s32.totalorder %v426_v21, 2576980377 }
 0x187   :  { %v482_v26 = vpop.eup %481  ;;  %v428_v6 = vxor.u32 2147483648, %v288_v2 }
 0x188   :  { %v246_v10 = vadd.f32 %v678_v8, %v245_v7  ;;  %v484_v28 = vpop.eup %483 }
 0x189   :  { %v486_v30 = vpop.eup %485  ;;  %vm324_vm7 = vcmp.ge.s32.totalorder %v428_v6, 2576980377 }
 0x18a   :  { %v247_v14 = vadd.f32 %v683_v11, %v246_v10  ;;  %v488_v31 = vpop.eup %487 }
 0x18b   :  { %v490_v33 = vpop.eup %489 }
 0x18c   :  { %v248_v18 = vadd.f32 %v688_v16, %v247_v14  ;;  %v427_v14 = vxor.u32 2147483648, %v287_v9 }
 0x18e   :  { %v249_v23 = vadd.f32 %v693_v19, %v248_v18  ;;  %v285_v18 = vld [vmem:[%s783_s5 + $0x30] sm:$0xff]  ;;  %vm321_vm8 = vcmp.ge.s32.totalorder %v427_v14, 2576980377 }
 0x18f   :  { %v425_v24 = vxor.u32 2147483648, %v285_v18 }
 0x190   :  { %v250_v25 = vadd.f32 %v480_v22, %v249_v23 }
 0x191   :  { %vm315_vm10 = vcmp.ge.s32.totalorder %v425_v24, 2576980377 }
 0x192   :  { %v251_v27 = vadd.f32 %v482_v26, %v250_v25 }
 0x194   :  { %v252_v29 = vadd.f32 %v484_v28, %v251_v27 }
 0x196   :  { %v253_v20 = vadd.f32 %v486_v30, %v252_v29  ;;  %v282_v29 = vld [vmem:[%s783_s5 + $0x18] sm:$0xff] }
 0x198   :  { %v254_v32 = vadd.f32 %v488_v31, %v253_v20 }
 0x19a   :  { %v255_v34 = vadd.f32 %v490_v33, %v254_v32  ;;  %v422_v32 = vxor.u32 2147483648, %v282_v29 }
 0x19c   :  { %v256_v35 = vrot.slane %v255_v34, 4  ;;  %vm306_vm13 = vcmp.ge.s32.totalorder %v422_v32, 2576980377 }
 0x19e   :  { %v257_v36 = vadd.f32 %v256_v35, %v255_v34  ;;  %v280_v34 = vld [vmem:[%s783_s5 + $0x8] sm:$0xff] }
 0x1a0   :  { %v258_v37 = vrot.slane %v257_v36, 2 }
 0x1a2   :  { %v259_v38 = vadd.f32 %v258_v37, %v257_v36  ;;  %v279_v37 = vld [vmem:[%s783_s5] sm:$0xff] }
 0x1a4   :  { %v260_v39 = vrot.slane %v259_v38, 1 }
 0x1a6   :  { %v261_v40 = vadd.f32 %v260_v39, %v259_v38  ;;  %v420_v38 = vxor.u32 2147483648, %v280_v34 }
 0x1a8   :  { %491 = vrcp.f32 %v261_v40  ;;  %v419_v40 = vxor.u32 2147483648, %v279_v37  ;;  %vm300_vm15 = vcmp.ge.s32.totalorder %v420_v38, 2576980377 }
 0x1aa   :  { %vm297_vm0 = vcmp.ge.s32.totalorder %v419_v40, 2576980377 }
 0x1ae   :  { %v705_v45 = vpop.eup %491 }
 0x1af   :  { %v278_v47 = vmul.f32 %v705_v45, %v490_v33  ;;  %v277_v48 = vmul.f32 %v705_v45, %v488_v31  ;;  %v276_v54 = vmul.f32 %v705_v45, %v486_v30  ;;  %v275_v60 = vmul.f32 %v705_v45, %v484_v28  ;;  %v281_v31 = vld [vmem:[%s783_s5 + $0x10] sm:$0xff] }
 0x1b0   :  { %v274_v1 = vmul.f32 %v705_v45, %v482_v26  ;;  %v273_v7 = vmul.f32 %v705_v45, %v480_v22  ;;  %v272_v12 = vmul.f32 %v705_v45, %v693_v19  ;;  %v271_v15 = vmul.f32 %v705_v45, %v688_v16  ;;  %v284_v22 = vld [vmem:[%s783_s5 + $0x28] sm:$0xff]  ;;  %v283_v26 = vld [vmem:[%s783_s5 + $0x20] sm:$0xff] }
 0x1b1   :  { %v358_v53 = vmul.f32 1.1111112, %v278_v47  ;;  %v357_v58 = vmul.f32 1.1111112, %v277_v48  ;;  %v356_v0 = vmul.f32 1.1111112, %v276_v54  ;;  %v270_v19 = vmul.f32 %v705_v45, %v683_v11 }
 0x1b2   :  { %v355_v5 = vmul.f32 1.1111112, %v275_v60  ;;  %v354_v10 = vmul.f32 1.1111112, %v274_v1  ;;  %v353_v17 = vmul.f32 1.1111112, %v273_v7  ;;  %v269_v16 = vmul.f32 %v705_v45, %v678_v8 }
 0x1b3   :  { %435 = vmatpush.msk.msra.mxu0 %vm342_vm1, %v358_v53  ;;  %v352_v23 = vmul.f32 1.1111112, %v272_v12  ;;  %v351_v25 = vmul.f32 1.1111112, %v271_v15  ;;  %v424_v27 = vxor.u32 2147483648, %v284_v22  ;;  %v268_v11 = vmul.f32 %v705_v45, %v673_v3 }
 0x1b4   :  { %v350_v28 = vmul.f32 1.1111112, %v270_v19  ;;  %v423_v30 = vxor.u32 2147483648, %v283_v26  ;;  %v349_v20 = vmul.f32 1.1111112, %v269_v16  ;;  %v267_v8 = vmul.f32 %v705_v45, %v668_v63 }
 0x1b5   :  { %436 = vmatpush.msk.msra.mxu0 %vm339_vm2, %v357_v58  ;;  %vm312_vm11 = vcmp.ge.s32.totalorder %v424_v27, 2576980377  ;;  %v348_v33 = vmul.f32 1.1111112, %v268_v11  ;;  %v266_v3 = vmul.f32 %v705_v45, %v663_v59  ;;  %v421_v35 = vxor.u32 2147483648, %v281_v31 }
 0x1b6   :  { %vm309_vm12 = vcmp.ge.s32.totalorder %v423_v30, 2576980377  ;;  %v347_v36 = vmul.f32 1.1111112, %v267_v8  ;;  %v265_v63 = vmul.f32 %v705_v45, %v658_v55  ;;  %v264_v59 = vmul.f32 %v705_v45, %v653_v51 }
 0x1b7   :  { %437 = vmatpush.msk.msra.mxu0 %vm336_vm3, %v356_v0  ;;  %v346_v39 = vmul.f32 1.1111112, %v266_v3  ;;  %vm303_vm14 = vcmp.ge.s32.totalorder %v421_v35, 2576980377  ;;  %v263_v42 = vmul.f32 %v705_v45, %v651_v50  ;;  %v398_v45 = vpop.permute.xlu0 %397 }
 0x1b8   :  { %v345_v41 = vmul.f32 1.1111112, %v265_v63  ;;  %v344_v55 = vmul.f32 1.1111112, %v264_v59 }
 0x1b9   :  { %438 = vmatpush.msk.msra.mxu0 %vm333_vm4, %v355_v5  ;;  %v343_v44 = vmul.f32 1.1111112, %v263_v42 }
 0x1bb   :  { %439 = vmatpush.msk.msra.mxu0 %vm330_vm5, %v354_v10 }
 0x1bd   :  { %440 = vmatpush.msk.msra.mxu0 %vm327_vm6, %v353_v17 }
 0x1bf   :  { %441 = vmatpush.msk.msra.mxu0 %vm324_vm7, %v352_v23 }
 0x1c1   :  { %442 = vmatpush.msk.msra.mxu0 %vm321_vm8, %v351_v25 }
 0x1c3   :  { %443 = vmatpush.msk.msra.mxu0 %vm318_vm9, %v350_v28 }
 0x1c5   :  { %444 = vmatpush.msk.msra.mxu0 %vm315_vm10, %v349_v20 }
 0x1c7   :  { %445 = vmatpush.msk.msra.mxu0 %vm312_vm11, %v348_v33 }
 0x1c9   :  { %446 = vmatpush.msk.msra.mxu0 %vm309_vm12, %v347_v36 }
 0x1cb   :  { %447 = vmatpush.msk.msra.mxu0 %vm306_vm13, %v346_v39 }
 0x1cd   :  { %448 = vmatpush.msk.msra.mxu0 %vm303_vm14, %v345_v41 }
 0x1cf   :  { %449 = vmatpush.msk.msra.mxu0 %vm300_vm15, %v344_v55 }
 0x1d1   :  { %450 = vmatpush.msk.msra.mxu0 %vm297_vm0, %v343_v44 }
 0x1d2   :  { %391 = vmatmul.f32.vlgmr.msra.gmra.mxu0 %v24_v43 }
 0x24f   :  { %v392_v51 = vpop.f32.mrf.mxu0 }
 0x250   :  { %v400_v50 = vperm.slane %v392_v51, 0 }
 0x252   :  { %v401_v46 = vmul.f32 %v400_v50, %v398_v45 }
 0x254   :  { %402 = vst [vmem:[#allocation2] sm:$0xff] %v401_v46 }
 0x255   :  { %413 = dma.vmem_to_hbm [thread:$0]  %s409_s14, 128, %s411_s17, [#allocation3]  }
 0x256   :  { %517 = dma.done.wait [#allocation3], 128  }
 0x257   :  { %518 = vsyncadd [#allocation3], 4294967168 }
 0x258   :  { %418 = vsyncpa [#allocation3], 1 }

</bundles_post_ra>
